<compile_context>
chip_gen: v5e
topology: v5e:2x2
jax: 0.10.0
libtpu: 0.0.40
codegen_flags: <defaults>
</compile_context>

<pallas_src>
import functools

import jax
import jax.numpy as jnp
from jax import lax
from jax.experimental import pallas as pl
from jax.experimental.pallas import tpu as pltpu

THRESH = 0.5


def _huber_partial_kernel(yt_ref, yp_ref, out_ref, *,
                          sub, groups, last_groups, num_tiles):
    """Per-tile Huber partial sum -> one (1, 8, 128) f32 output block."""
    i = pl.program_id(0)

    def tile_sum(n_groups):
        # Stream the (TR, 128) tile through (sub, 128) slices; accumulate in a
        # single (8, 128) f32 carry (one vreg) -- VPU adds only, no XLU.
        def body(g, acc):
            r0 = pl.multiple_of(g * sub, sub)
            yt = yt_ref[pl.ds(r0, sub), :].astype(jnp.float32)
            yp = yp_ref[pl.ds(r0, sub), :].astype(jnp.float32)
            # TODO(synk): for bf16 inputs on v6e/v7x the sub/abs could run in
            # bf16 on the VPU before the f32 upcast (tiny rounding change).
            t = jnp.abs(yt - yp)
            m = jnp.minimum(t, THRESH)
            h = m * (t - 0.5 * m)   # == 0.5*t^2 if t<=thr else thr*(t-thr/2)
            return acc + h.reshape(sub // 8, 8, 128).sum(axis=0)

        return lax.fori_loop(0, n_groups, body,
                             jnp.zeros((8, 128), jnp.float32),
                             unroll=min(8, n_groups))

    if last_groups == groups:
        # rows % TR == 0 (common case): uniform, branch-free path for every tile.
        out_ref[...] = tile_sum(groups)[None]
    else:
        # Ragged last tile: only it pays (a statically shorter loop); the valid
        # row count is a static multiple of `sub`, so no per-element mask/iota.
        @pl.when(i < num_tiles - 1)
        def _():
            out_ref[...] = tile_sum(groups)[None]

        @pl.when(i == num_tiles - 1)
        def _():
            out_ref[...] = tile_sum(last_groups)[None]


def _huber_sum_jnp(yt, yp):
    t = jnp.abs(yt.astype(jnp.float32) - yp.astype(jnp.float32))
    m = jnp.minimum(t, THRESH)
    return jnp.sum(m * (t - 0.5 * m))


def huber_loss(y_true, y_pred):
    assert y_true.shape == y_pred.shape
    n = y_true.size

    yt = jnp.ravel(y_true)   # keep native dtype; upcast happens in-kernel
    yp = jnp.ravel(y_pred)

    # Sublane tile for the native dtype (f32: 8, bf16: 16, int8/fp8: 32).
    sub = max(8, 32 // jnp.dtype(yt.dtype).itemsize)
    chunk = sub * 128

    # Lane-aligned head goes through the Pallas kernel; the (< chunk) element
    # tail is summed with plain jnp below (no whole-array pad/copy).
    n_main = (n // chunk) * chunk

    total = jnp.float32(0.0)

    if n_main > 0:
        rows = n_main // 128                      # multiple of `sub`
        yt2 = yt[:n_main].reshape(rows, 128)
        yp2 = yp[:n_main].reshape(rows, 128)

        # Row tile: TR=4096 -> ~2 MiB/input/buffer (f32), 8 MiB double-buffered
        # input VMEM -- well under the 32 MiB scoped limit on every generation.
        # Keep num_tiles >= 2 whenever possible so v7x can shard across both
        # TensorCores (grid axis is "parallel").
        TR_MAX = 4096
        if rows <= 2 * sub:
            TR = rows
        else:
            half = -(-rows // 2)
            TR = min(TR_MAX, ((half + sub - 1) // sub) * sub)
        num_tiles = pl.cdiv(rows, TR)
        last_rows = rows - (num_tiles - 1) * TR   # in (0, TR], multiple of `sub`

        kernel = functools.partial(
            _huber_partial_kernel,
            sub=sub,
            groups=TR // sub,
            last_groups=last_rows // sub,
            num_tiles=num_tiles,
        )

        partials = pl.pallas_call(
            kernel,
            out_shape=jax.ShapeDtypeStruct((num_tiles, 8, 128), jnp.float32),
            grid_spec=pltpu.PrefetchScalarGridSpec(
                num_scalar_prefetch=0,
                grid=(num_tiles,),
                in_specs=[
                    pl.BlockSpec((TR, 128), lambda i: (i, 0)),
                    pl.BlockSpec((TR, 128), lambda i: (i, 0)),
                ],
                out_specs=pl.BlockSpec((1, 8, 128), lambda i: (i, 0, 0)),
            ),
            compiler_params=pltpu.CompilerParams(
                dimension_semantics=("parallel",),
                vmem_limit_bytes=32 * 1024 * 1024,
            ),
        )(yt2, yp2)

        total = total + jnp.sum(partials)

    if n_main < n:
        total = total + _huber_sum_jnp(yt[n_main:], yp[n_main:])

    return total / jnp.float32(n)


def _reference(y_true, y_pred):
    t = jnp.abs(y_true.astype(jnp.float32) - y_pred.astype(jnp.float32))
    h = jnp.where(t <= THRESH, 0.5 * t * t, THRESH * (t - THRESH * 0.5))
    return jnp.mean(h)


if __name__ == "__main__":
    key = jax.random.PRNGKey(0)
    k1, k2 = jax.random.split(key)
    shape = (2, 4, 16, 16)
    y_true = jax.random.normal(k1, shape, dtype=jnp.float32)
    y_pred = jax.random.normal(k2, shape, dtype=jnp.float32)

    out = huber_loss(y_true, y_pred)
    jax.block_until_ready(out)

    ref = _reference(y_true, y_pred)
    assert jnp.allclose(out, ref, atol=1e-5, rtol=1e-5), (out, ref)
    print("KERNEL_OK")
</pallas_src>

<mosaic_0001>
module attributes {stable_mosaic.version = 11 : i64} {
  func.func @_huber_partial_kernel(%arg0: i32, %arg1: memref<16x128xf32, #tpu.memory_space<vmem>>, %arg2: memref<16x128xf32, #tpu.memory_space<vmem>>, %arg3: memref<1x8x128xf32, #tpu.memory_space<vmem>>) attributes {dimension_semantics = [#tpu.dimension_semantics<parallel>], iteration_bounds = array<i64: 1>, scalar_prefetch = 0 : i64, scratch_operands = 0 : i64, tpu.core_type = #tpu.core_type<tc>, window_params = [{transform_indices = @transform_0, window_bounds = array<i64: 16, 128>}, {transform_indices = @transform_1, window_bounds = array<i64: 16, 128>}, {transform_indices = @transform_2, window_bounds = array<i64: 1, 8, 128>}]} {
    %cst = arith.constant 0.000000e+00 : f32
    %0 = vector.broadcast %cst : f32 to vector<8x128xf32>
    %c0_i32 = arith.constant 0 : i32
    %c8_i32 = arith.constant 8 : i32
    %1 = arith.muli %c0_i32, %c8_i32 : i32
    %2 = tpu.assume_multiple %1, 8 : i32
    %3 = arith.index_cast %2 : i32 to index
    %c0 = arith.constant 0 : index
    %4 = vector.load %arg1[%3, %c0] : memref<16x128xf32, #tpu.memory_space<vmem>>, vector<8x128xf32>
    %5 = arith.index_cast %2 : i32 to index
    %c0_0 = arith.constant 0 : index
    %6 = vector.load %arg2[%5, %c0_0] : memref<16x128xf32, #tpu.memory_space<vmem>>, vector<8x128xf32>
    %7 = arith.subf %4, %6 : vector<8x128xf32>
    %8 = math.absf %7 : vector<8x128xf32>
    %cst_1 = arith.constant 5.000000e-01 : f32
    %9 = vector.broadcast %cst_1 : f32 to vector<8x128xf32>
    %10 = arith.minimumf %8, %9 : vector<8x128xf32>
    %cst_2 = arith.constant 5.000000e-01 : f32
    %11 = vector.broadcast %cst_2 : f32 to vector<8x128xf32>
    %12 = arith.mulf %11, %10 : vector<8x128xf32>
    %13 = arith.subf %8, %12 : vector<8x128xf32>
    %14 = arith.mulf %10, %13 : vector<8x128xf32>
    %15 = vector.shape_cast %14 : vector<8x128xf32> to vector<1x8x128xf32>
    %cst_3 = arith.constant dense<0.000000e+00> : vector<8x128xf32>
    %16 = vector.multi_reduction <add>, %15, %cst_3 [0] : vector<1x8x128xf32> to vector<8x128xf32>
    %17 = arith.addf %0, %16 : vector<8x128xf32>
    %c1_i32 = arith.constant 1 : i32
    %c8_i32_4 = arith.constant 8 : i32
    %18 = arith.muli %c1_i32, %c8_i32_4 : i32
    %19 = tpu.assume_multiple %18, 8 : i32
    %20 = arith.index_cast %19 : i32 to index
    %c0_5 = arith.constant 0 : index
    %21 = vector.load %arg1[%20, %c0_5] : memref<16x128xf32, #tpu.memory_space<vmem>>, vector<8x128xf32>
    %22 = arith.index_cast %19 : i32 to index
    %c0_6 = arith.constant 0 : index
    %23 = vector.load %arg2[%22, %c0_6] : memref<16x128xf32, #tpu.memory_space<vmem>>, vector<8x128xf32>
    %24 = arith.subf %21, %23 : vector<8x128xf32>
    %25 = math.absf %24 : vector<8x128xf32>
    %cst_7 = arith.constant 5.000000e-01 : f32
    %26 = vector.broadcast %cst_7 : f32 to vector<8x128xf32>
    %27 = arith.minimumf %25, %26 : vector<8x128xf32>
    %cst_8 = arith.constant 5.000000e-01 : f32
    %28 = vector.broadcast %cst_8 : f32 to vector<8x128xf32>
    %29 = arith.mulf %28, %27 : vector<8x128xf32>
    %30 = arith.subf %25, %29 : vector<8x128xf32>
    %31 = arith.mulf %27, %30 : vector<8x128xf32>
    %32 = vector.shape_cast %31 : vector<8x128xf32> to vector<1x8x128xf32>
    %cst_9 = arith.constant dense<0.000000e+00> : vector<8x128xf32>
    %33 = vector.multi_reduction <add>, %32, %cst_9 [0] : vector<1x8x128xf32> to vector<8x128xf32>
    %34 = arith.addf %17, %33 : vector<8x128xf32>
    %c2_i32 = arith.constant 2 : i32
    %35 = vector.shape_cast %34 : vector<8x128xf32> to vector<1x8x128xf32>
    %c0_10 = arith.constant 0 : index
    %c0_11 = arith.constant 0 : index
    %c0_12 = arith.constant 0 : index
    %36 = vector.load %arg3[%c0_10, %c0_11, %c0_12] : memref<1x8x128xf32, #tpu.memory_space<vmem>>, vector<1x8x128xf32>
    tpu.vector_store %arg3[%c0_10, %c0_11, %c0_12], %35 {strides = array<i32>} : memref<1x8x128xf32, #tpu.memory_space<vmem>>, vector<1x8x128xf32>,
    return
  }
  func.func @transform_0(%arg0: i32) -> (i32, i32) {
    %c0_i32 = arith.constant 0 : i32
    %c0_i32_0 = arith.constant 0 : i32
    return %arg0, %c0_i32 : i32, i32
  }
  func.func @transform_1(%arg0: i32) -> (i32, i32) {
    %c0_i32 = arith.constant 0 : i32
    %c0_i32_0 = arith.constant 0 : i32
    return %arg0, %c0_i32 : i32, i32
  }
  func.func @transform_2(%arg0: i32) -> (i32, i32, i32) {
    %c0_i32 = arith.constant 0 : i32
    %c0_i32_0 = arith.constant 0 : i32
    %c0_i32_1 = arith.constant 0 : i32
    return %arg0, %c0_i32, %c0_i32_0 : i32, i32, i32
  }
}

</mosaic_0001>

<bundles_post_ra>
// kernel: tpu_custom_call.1
= control target key start
LH: loop header
LB: loop body
LE: loop exit
PB: predicated region body
PF: predicated region fallthrough
CT: control target
= control target key end

     0   :  { %7 = vsyncpa [#allocation3], 0  ;;  %s197_s0 = inlined_call_operand.hbm [shape: f32[16,128], index: 0, kind: input, shape index: {}]   ;;  %s198_s1 = inlined_call_operand.hbm [shape: f32[16,128], index: 1, kind: input, shape index: {}]   ;;  %s199_s2 = inlined_call_operand.hbm [shape: f32[1,8,128], index: 2, kind: output, shape index: {}]  }
   0x1   :  { %8 = vsyncpa [#allocation6], 0 }
   0x2   :  { %9 = vsyncpa [#allocation4], 0  ;;  %s14_s11 = sshll.u32 %s197_s0, 4  ;;  %s168_s12 = smov [#allocation2]   ;;  %s15_s11 = int_to_ptr.hbm [resolvable:$true] %s14_s11 }
   0x3   :  { %s16_s13 = sshll.u32 %s168_s12, 4  ;;  %s27_s16 = sshll.u32 %s198_s1, 4  ;;  %s17_s13 = int_to_ptr.vmem [resolvable:$true] %s16_s13  ;;  %s28_s16 = int_to_ptr.hbm [resolvable:$true] %s27_s16 }
   0x4   :  { %s169_s17 = smov 128   ;;  %s170_s18 = smov 8  }
   0x5   :  { %22 = dma.hbm_to_vmem [thread:$0]  %s15_s11, 256, %s17_s13, [#allocation3], %s169_s17, %s169_s17, %s170_s18  }
   0x6   :  { %s171_s19 = smov [#allocation5]  }
   0x7   :  { %s29_s20 = sshll.u32 %s171_s19, 4  ;;  %s30_s20 = int_to_ptr.vmem [resolvable:$true] %s29_s20 }
   0x8   :  { %35 = dma.hbm_to_vmem [thread:$0]  %s28_s16, 256, %s30_s20, [#allocation6], %s169_s17, %s169_s17, %s170_s18  }
   0x9   :  { %162 = dma.done.wait [#allocation3], 256  }
   0xa   :  { %163 = vsyncadd [#allocation3], 4294967040 }
   0xb   :  { %164 = dma.done.wait [#allocation6], 256  }
   0xc   :  { %165 = vsyncadd [#allocation6], 4294967040  ;;  %v44_v0 = vld [vmem:[#allocation2] sm:$0xff]  ;;  %v45_v1 = vld [vmem:[#allocation5] sm:$0xff]  ;;  %s172_s0 = smov [#allocation7]   ;;  %s74_s23 = sshll.u32 %s199_s2, 4  ;;  %s75_s23 = int_to_ptr.hbm [resolvable:$true] %s74_s23 }
   0xd   :  { %v55_v2 = vld [vmem:[#allocation2 + $0x8] sm:$0xff]  ;;  %v46_v3 = vsub.f32 %v44_v0, %v45_v1  ;;  %v57_v4 = vld [vmem:[#allocation5 + $0x8] sm:$0xff]  ;;  %s72_s1 = sshll.u32 %s172_s0, 4  ;;  %s73_s1 = int_to_ptr.vmem [resolvable:$true] %s72_s1 }
   0xe   :  { %v58_v5 = vsub.f32 %v55_v2, %v57_v4 }
   0xf   :  { %v47_v6 = vand.u32 2147483647, %v46_v3 }
  0x10   :  { %v59_v7 = vand.u32 2147483647, %v58_v5 }
  0x11   :  { %v48_v8 = vmin.f32 %v47_v6, 0.5 }
  0x12   :  { %v60_v9 = vmin.f32 %v59_v7, 0.5 }
  0x13   :  { %v49_v10 = vmul.f32 0.5, %v48_v8 }
  0x14   :  { %v61_v11 = vmul.f32 0.5, %v60_v9 }
  0x15   :  { %v50_v12 = vsub.f32 %v47_v6, %v49_v10 }
  0x16   :  { %v62_v13 = vsub.f32 %v59_v7, %v61_v11 }
  0x17   :  { %v51_v14 = vmul.f32 %v50_v12, %v48_v8 }
  0x18   :  { %v63_v15 = vmul.f32 %v62_v13, %v60_v9 }
  0x1a   :  { %v65_v16 = vadd.f32 %v63_v15, %v51_v14 }
  0x1c   :  { %66 = vst [vmem:[#allocation7] sm:$0xff] %v65_v16 }
  0x1d   :  { %77 = dma.vmem_to_hbm [thread:$0]  %s73_s1, 128, %s75_s23, [#allocation4]  }
  0x1e   :  { %166 = dma.done.wait [#allocation4], 128  }
  0x1f   :  { %167 = vsyncadd [#allocation4], 4294967168 }
  0x20   :  { %82 = vsyncpa [#allocation3], 1 }
  0x21   :  { %83 = vsyncpa [#allocation6], 1 }
  0x22   :  { %84 = vsyncpa [#allocation4], 1 }

</bundles_post_ra>
